<compile_context>
chip_gen: v5e
topology: v5e:2x2
jax: 0.10.0
libtpu: 0.0.40
codegen_flags: <defaults>
</compile_context>

<pallas_src>
import jax
import jax.numpy as jnp
from jax.experimental import pallas as pl
from jax.experimental.pallas import tpu as pltpu


def _add_kernel(a_ref, b_ref, o_ref):
    # Pure VPU elementwise add on one VMEM tile.
    o_ref[...] = a_ref[...] + b_ref[...]


# ~2 MiB per f32 block.  With 3 arrays (2 in + 1 out) x 2 pipeline buffers
# that's ~12 MiB of VMEM, which fits v5e's 16 MiB scoped default, v6e's
# 32 MiB, and v7x's 32 MiB scoped / 64 MiB physical without raising limits.
_BLOCK_BYTES = 2 * 1024 * 1024

# Below this element count the XLA-fused add is cheaper than any Pallas
# launch (the op is trivially memory-bound; kernel overhead dominates).
_MIN_PALLAS_ELEMENTS = 1 << 20


def _choose_lanes(total: int):
    """Widest lane dim (multiple of 128, capped at 1024) that divides total."""
    for lanes in (1024, 512, 256, 128):
        if total % lanes == 0:
            return lanes
    return None


def _pallas_add_2d(a2: jax.Array, b2: jax.Array) -> jax.Array:
    rows, lanes = a2.shape
    bytes_per_elem = jnp.dtype(a2.dtype).itemsize

    # Row-tile sized to ~_BLOCK_BYTES, rounded down to a multiple of 8
    # (sublane granularity).  If the whole array is smaller than one tile,
    # use a single full-array block (always layout-legal).
    tile_r = (_BLOCK_BYTES // bytes_per_elem) // lanes
    tile_r = max(8, (tile_r // 8) * 8)
    if tile_r >= rows:
        tile_r = rows

    grid = (pl.cdiv(rows, tile_r),)

    return pl.pallas_call(
        _add_kernel,
        out_shape=jax.ShapeDtypeStruct((rows, lanes), a2.dtype),
        grid=grid,
        in_specs=[
            pl.BlockSpec((tile_r, lanes), lambda i: (i, 0)),
            pl.BlockSpec((tile_r, lanes), lambda i: (i, 0)),
        ],
        out_specs=pl.BlockSpec((tile_r, lanes), lambda i: (i, 0)),
        compiler_params=pltpu.CompilerParams(
            # Row-tiles are independent: lets v7x shard the streaming add
            # across both TensorCores (no-op on single-TC v5e/v6e).
            dimension_semantics=("parallel",),
        ),
    )(a2, b2)


def siamese_forward(
    input1: jax.Array,
    input2: jax.Array,
    *,
    min_pallas_elements: int = _MIN_PALLAS_ELEMENTS,
) -> jax.Array:
    """Pallas implementation of SiameseNetwork.forward.

    Returns input1 + input2 (the self-referential inner model call is
    identity — see TODO above).  Large, 128-aligned inputs stream through a
    tiled, double-buffered Pallas kernel; tiny or awkwardly sized inputs fall
    back to the XLA-fused add (faster than kernel launch overhead / masked
    partial stores).
    """
    assert input1.shape == input2.shape
    assert input1.dtype == input2.dtype

    total = input1.size
    lanes = _choose_lanes(total)
    if total < min_pallas_elements or lanes is None:
        # Tiny input or size not a multiple of 128: XLA fuses this for free
        # and avoids masked partial stores / launch overhead.
        return input1 + input2

    orig_shape = input1.shape
    rows = total // lanes
    a2 = input1.reshape(rows, lanes)
    b2 = input2.reshape(rows, lanes)
    return _pallas_add_2d(a2, b2).reshape(orig_shape)


if __name__ == "__main__":
    key = jax.random.PRNGKey(0)
    k1, k2, k3, k4 = jax.random.split(key, 4)

    # 1) Small NCHW inputs (batch=2, channels=4, spatial=16x16): wrapper takes
    #    the XLA fast path (kernel would be pure overhead at 8 KiB).
    x1 = jax.random.normal(k1, (2, 4, 16, 16), dtype=jnp.float32)
    x2 = jax.random.normal(k2, (2, 4, 16, 16), dtype=jnp.float32)
    out_small = siamese_forward(x1, x2)
    jax.block_until_ready(out_small)
    ref_small = x1 + x2
    assert out_small.shape == ref_small.shape
    assert jnp.allclose(out_small, ref_small, atol=1e-6), "small-path mismatch"

    # 2) Same small inputs, forced through the Pallas path (single full block)
    #    so the kernel itself is exercised on TPU.
    out_forced = siamese_forward(x1, x2, min_pallas_elements=0)
    jax.block_until_ready(out_forced)
    assert jnp.allclose(out_forced, ref_small, atol=1e-6), "forced-path mismatch"

    # 3) Larger NCHW inputs (2 M elements, 8 MiB/input): exercises the real
    #    multi-block grid with 2 MiB lane-dense tiles and double-buffering.
    y1 = jax.random.normal(k3, (2, 4, 512, 512), dtype=jnp.float32)
    y2 = jax.random.normal(k4, (2, 4, 512, 512), dtype=jnp.float32)
    out_big = siamese_forward(y1, y2)
    jax.block_until_ready(out_big)
    ref_big = y1 + y2
    assert out_big.shape == ref_big.shape
    assert jnp.allclose(out_big, ref_big, atol=1e-6), "grid-path mismatch"

    print("KERNEL_OK")
</pallas_src>

<mosaic_0001>
module attributes {stable_mosaic.version = 11 : i64} {
  func.func @_add_kernel(%arg0: i32, %arg1: memref<2x1024xf32, #tpu.memory_space<vmem>>, %arg2: memref<2x1024xf32, #tpu.memory_space<vmem>>, %arg3: memref<2x1024xf32, #tpu.memory_space<vmem>>) attributes {dimension_semantics = [#tpu.dimension_semantics<parallel>], iteration_bounds = array<i64: 1>, scalar_prefetch = 0 : i64, scratch_operands = 0 : i64, tpu.core_type = #tpu.core_type<tc>, window_params = [{transform_indices = @transform_0, window_bounds = array<i64: 2, 1024>}, {transform_indices = @transform_1, window_bounds = array<i64: 2, 1024>}, {transform_indices = @transform_2, window_bounds = array<i64: 2, 1024>}]} {
    %c0 = arith.constant 0 : index
    %c0_0 = arith.constant 0 : index
    %0 = vector.load %arg1[%c0, %c0_0] : memref<2x1024xf32, #tpu.memory_space<vmem>>, vector<2x1024xf32>
    %c0_1 = arith.constant 0 : index
    %c0_2 = arith.constant 0 : index
    %1 = vector.load %arg2[%c0_1, %c0_2] : memref<2x1024xf32, #tpu.memory_space<vmem>>, vector<2x1024xf32>
    %2 = arith.addf %0, %1 : vector<2x1024xf32>
    %c0_3 = arith.constant 0 : index
    %c0_4 = arith.constant 0 : index
    %3 = vector.load %arg3[%c0_3, %c0_4] : memref<2x1024xf32, #tpu.memory_space<vmem>>, vector<2x1024xf32>
    tpu.vector_store %arg3[%c0_3, %c0_4], %2 {strides = array<i32>} : memref<2x1024xf32, #tpu.memory_space<vmem>>, vector<2x1024xf32>,
    return
  }
  func.func @transform_0(%arg0: i32) -> (i32, i32) {
    %c0_i32 = arith.constant 0 : i32
    %c0_i32_0 = arith.constant 0 : i32
    return %arg0, %c0_i32 : i32, i32
  }
  func.func @transform_1(%arg0: i32) -> (i32, i32) {
    %c0_i32 = arith.constant 0 : i32
    %c0_i32_0 = arith.constant 0 : i32
    return %arg0, %c0_i32 : i32, i32
  }
  func.func @transform_2(%arg0: i32) -> (i32, i32) {
    %c0_i32 = arith.constant 0 : i32
    %c0_i32_0 = arith.constant 0 : i32
    return %arg0, %c0_i32 : i32, i32
  }
}

</mosaic_0001>

<bundles_post_ra>
// kernel: tpu_custom_call.1
= control target key start
LH: loop header
LB: loop body
LE: loop exit
PB: predicated region body
PF: predicated region fallthrough
CT: control target
= control target key end

     0   :  { %7 = vsyncpa [#allocation3], 0  ;;  %s174_s0 = inlined_call_operand.hbm [shape: f32[2,1024], index: 0, kind: input, shape index: {}]   ;;  %s175_s1 = inlined_call_operand.hbm [shape: f32[2,1024], index: 1, kind: input, shape index: {}]   ;;  %s176_s2 = inlined_call_operand.hbm [shape: f32[2,1024], index: 2, kind: output, shape index: {}]  }
   0x1   :  { %8 = vsyncpa [#allocation6], 0 }
   0x2   :  { %9 = vsyncpa [#allocation4], 0  ;;  %s15_s11 = sshll.u32 %s174_s0, 4  ;;  %s147_s12 = smov [#allocation2]   ;;  %s16_s11 = int_to_ptr.hbm [resolvable:$true] %s15_s11 }
   0x3   :  { %s17_s13 = sshll.u32 %s147_s12, 4  ;;  %s26_s16 = sshll.u32 %s175_s1, 4  ;;  %s18_s13 = int_to_ptr.vmem [resolvable:$true] %s17_s13  ;;  %s27_s16 = int_to_ptr.hbm [resolvable:$true] %s26_s16 }
   0x4   :  { %20 = dma.hbm_to_vmem [thread:$0]  %s16_s11, 256, %s18_s13, [#allocation3]  }
   0x5   :  { %s148_s17 = smov [#allocation5]  }
   0x6   :  { %s28_s18 = sshll.u32 %s148_s17, 4  ;;  %s29_s18 = int_to_ptr.vmem [resolvable:$true] %s28_s18 }
   0x7   :  { %31 = dma.hbm_to_vmem [thread:$0]  %s27_s16, 256, %s29_s18, [#allocation6]  }
   0x8   :  { %141 = dma.done.wait [#allocation3], 256  }
   0x9   :  { %142 = vsyncadd [#allocation3], 4294967040 }
   0xa   :  { %143 = dma.done.wait [#allocation6], 256  }
   0xb   :  { %144 = vsyncadd [#allocation6], 4294967040  ;;  %s149_s19 = smov [#allocation7]   ;;  %s55_s22 = sshll.u32 %s176_s2, 4  ;;  %v40_v0 = vld [vmem:[#allocation2] sm:$0xff]  ;;  %v42_v1 = vld [vmem:[#allocation5] sm:$0xff]  ;;  %s56_s22 = int_to_ptr.hbm [resolvable:$true] %s55_s22 }
   0xc   :  { %s53_s0 = sshll.u32 %s149_s19, 4  ;;  %v41_v2 = vld [vmem:[#allocation2 + $0x8] sm:$0xff]  ;;  %v44_v3 = vadd.f32 %v42_v1, %v40_v0  ;;  %v43_v4 = vld [vmem:[#allocation5 + $0x8] sm:$0xff]  ;;  %s54_s0 = int_to_ptr.vmem [resolvable:$true] %s53_s0 }
   0xd   :  { %v45_v5 = vadd.f32 %v43_v4, %v41_v2 }
   0xe   :  { %46 = vst [vmem:[#allocation7] sm:$0xff] %v44_v3 }
   0xf   :  { %47 = vst [vmem:[#allocation7 + $0x8] sm:$0xff] %v45_v5 }
  0x10   :  { %58 = dma.vmem_to_hbm [thread:$0]  %s54_s0, 256, %s56_s22, [#allocation4]  }
  0x11   :  { %145 = dma.done.wait [#allocation4], 256  }
  0x12   :  { %146 = vsyncadd [#allocation4], 4294967040 }
  0x13   :  { %63 = vsyncpa [#allocation3], 1 }
  0x14   :  { %64 = vsyncpa [#allocation6], 1 }
  0x15   :  { %65 = vsyncpa [#allocation4], 1 }

</bundles_post_ra>
